<compile_context>
chip_gen: v7x
topology: tpu7x:2x2x1
jax: 0.10.0
libtpu: 0.0.40
codegen_flags: <defaults>
</compile_context>

<pallas_src>
import functools

import jax
import jax.numpy as jnp
import numpy as np
from jax.experimental import pallas as pl
from jax.experimental.pallas import tpu as pltpu

_TR_MAX = 512        # rows (of 128 cells) per grid block
_CHUNK_ROWS = 16     # rows per register-resident compute chunk
_N_CORE_SPLITS = 2   # leading "parallel" grid axis (dual-TC split on v7x)


def _block_partial_sums(pred_ref, targ_ref, chunk_rows):
    """Chunked accumulation over one (5, TR, 128) block of cells.

    Returns three (8, 128) float32 partial-sum tiles (loc, conf_obj,
    conf_noobj contributions, before lambda scaling).  All per-chunk
    intermediates stay in vregs; only VALU adds feed the carries.
    """
    tr = pred_ref.shape[1]
    n_chunks = tr // chunk_rows

    def fold(x):  # (chunk_rows, 128) -> (8, 128); sublane-group reshape, VALU adds
        return jnp.sum(x.reshape(chunk_rows // 8, 8, 128), axis=0)

    def body(c, carry):
        a_loc, a_cobj, a_cnoobj = carry
        r0 = pl.multiple_of(c * chunk_rows, chunk_rows)
        p = pred_ref[:, pl.ds(r0, chunk_rows), :].astype(jnp.float32)
        t = targ_ref[:, pl.ds(r0, chunk_rows), :].astype(jnp.float32)

        px, py, pw, ph, pc = p[0], p[1], p[2], p[3], p[4]
        tx, ty, tw, th, tc = t[0], t[1], t[2], t[3], t[4]

        obj = (tc > 0.0).astype(jnp.float32)
        noobj = (tc == 0.0).astype(jnp.float32)

        # Localization term (masked MSE, reduction='sum'); lambda applied at end.
        dx = px - tx
        dy = py - ty
        dw = pw - tw
        dh = ph - th
        loc_c = obj * (dx * dx + dy * dy + dw * dw + dh * dh)

        # IoU between pred and target boxes (xywh).  Half-extents hoisted;
        # areas computed directly as w*h (mathematically identical to the
        # corner form, saves 4 subs/cell; stays within rtol=1e-5).
        phw = pw * 0.5
        phh = ph * 0.5
        thw = tw * 0.5
        thh = th * 0.5
        iw = jnp.maximum(
            jnp.minimum(px + phw, tx + thw) - jnp.maximum(px - phw, tx - thw), 0.0)
        ih = jnp.maximum(
            jnp.minimum(py + phh, ty + thh) - jnp.maximum(py - phh, ty - thh), 0.0)
        inter = iw * ih
        union = pw * ph + tw * th - inter
        # Exact divide kept so the summed losses stay within rtol=1e-5 of the
        # reference (approx-reciprocal would only matter if VALU-bound).
        iou = inter / (union + 1e-6)

        d_obj = iou - pc
        cobj_c = obj * d_obj * d_obj
        d_no = pc - tc
        cnoobj_c = noobj * d_no * d_no

        return (a_loc + fold(loc_c),
                a_cobj + fold(cobj_c),
                a_cnoobj + fold(cnoobj_c))

    zeros = jnp.zeros((8, 128), jnp.float32)
    return jax.lax.fori_loop(0, n_chunks, body, (zeros, zeros, zeros),
                             unroll=True)


def _scalar_row(total, loc, cobj, cnoobj):
    """(8, 128) tile with lanes 0..3 = total, loc, conf_obj, conf_noobj."""
    lanes = jax.lax.broadcasted_iota(jnp.int32, (8, 128), 1)
    return jnp.where(lanes == 0, total,
           jnp.where(lanes == 1, loc,
           jnp.where(lanes == 2, cobj,
           jnp.where(lanes == 3, cnoobj, 0.0))))


def _yolo_loss_grid_kernel(pred_ref, targ_ref, out_ref,
                           acc_loc, acc_cobj, acc_cnoobj,
                           *, lambda_coord, lambda_noobj, chunk_rows):
    j = pl.program_id(1)  # reduction ("arbitrary") axis within this core

    @pl.when(j == 0)
    def _():
        acc_loc[...] = jnp.zeros_like(acc_loc)
        acc_cobj[...] = jnp.zeros_like(acc_cobj)
        acc_cnoobj[...] = jnp.zeros_like(acc_cnoobj)

    a_loc, a_cobj, a_cnoobj = _block_partial_sums(pred_ref, targ_ref, chunk_rows)
    acc_loc[...] += a_loc
    acc_cobj[...] += a_cobj
    acc_cnoobj[...] += a_cnoobj

    @pl.when(j == pl.num_programs(1) - 1)
    def _():
        loc = lambda_coord * jnp.sum(acc_loc[...])
        cobj = jnp.sum(acc_cobj[...])
        cnoobj = lambda_noobj * jnp.sum(acc_cnoobj[...])
        total = loc + cobj + cnoobj
        out_ref[0] = _scalar_row(total, loc, cobj, cnoobj)


def _yolo_loss_single_kernel(pred_ref, targ_ref, out_ref,
                             *, lambda_coord, lambda_noobj, chunk_rows):
    a_loc, a_cobj, a_cnoobj = _block_partial_sums(pred_ref, targ_ref, chunk_rows)
    loc = lambda_coord * jnp.sum(a_loc)
    cobj = jnp.sum(a_cobj)
    cnoobj = lambda_noobj * jnp.sum(a_cnoobj)
    total = loc + cobj + cnoobj
    out_ref[...] = _scalar_row(total, loc, cobj, cnoobj)


@functools.partial(jax.jit, static_argnames=("lambda_coord", "lambda_noobj"))
def yolo_v1_loss(pred, target, lambda_coord=5.0, lambda_noobj=0.5):
    """pred, target: (B, S, S, 5) channels-last arrays ([x, y, w, h, conf]).

    Returns (total_loss, loc_loss, conf_loss_obj, conf_loss_noobj) scalars,
    matching YOLOv1Loss.forward.  Inputs may be bf16 (kernel upcasts to f32
    internally), halving HBM traffic on the mem-bound path.
    """
    assert pred.shape == target.shape and pred.shape[-1] == 5
    C = pred.shape[-1]
    n_cells = int(np.prod(pred.shape[:-1]))

    # Cells laid out as dense (rows, 128-lane) slabs; rows rounded to a
    # multiple of 8 sublanes.
    rows = -(-n_cells // 128)
    rows = max(8, ((rows + 7) // 8) * 8)

    single_block = rows <= _TR_MAX
    if single_block:
        tr = rows
        rows_pad = rows
    else:
        tr = _TR_MAX
        blk = _N_CORE_SPLITS * tr
        rows_pad = ((rows + blk - 1) // blk) * blk
    n_pad = rows_pad * 128
    chunk_rows = _CHUNK_ROWS if tr % _CHUNK_ROWS == 0 else 8

    def to_kernel_layout(x):
        # TODO(synk): emit channel-major (5, N) directly from the producer (or
        # deinterleave in-kernel via XLU roll/lane masks) to eliminate this
        # repack pass; under jit the reshape+pad+transpose fuses into a single
        # HBM copy per tensor.
        x = x.reshape(n_cells, C)
        x = jnp.pad(x, ((0, n_pad - n_cells), (0, 0)))
        return x.T.reshape(C, rows_pad, 128)

    p3d = to_kernel_layout(pred)
    t3d = to_kernel_layout(target)

    itemsize = np.dtype(pred.dtype).itemsize
    cost = pl.CostEstimate(
        flops=40 * n_pad,
        transcendentals=0,
        bytes_accessed=2 * C * n_pad * itemsize + 2 * 8 * 128 * 4)

    if single_block:
        # Small inputs (e.g. B x 7 x 7): one non-pipelined block, no grid /
        # scratch / when machinery.
        kernel = functools.partial(
            _yolo_loss_single_kernel,
            lambda_coord=float(lambda_coord),
            lambda_noobj=float(lambda_noobj),
            chunk_rows=chunk_rows)
        out = pl.pallas_call(
            kernel,
            out_shape=jax.ShapeDtypeStruct((8, 128), jnp.float32),
            in_specs=[pl.BlockSpec(memory_space=pltpu.MemorySpace.VMEM),
                      pl.BlockSpec(memory_space=pltpu.MemorySpace.VMEM)],
            out_specs=pl.BlockSpec(memory_space=pltpu.MemorySpace.VMEM),
            cost_estimate=cost,
        )(p3d, t3d)
        return out[0, 0], out[0, 1], out[0, 2], out[0, 3]

    n_blocks = rows_pad // tr
    nbpc = n_blocks // _N_CORE_SPLITS   # blocks per core along the reduction axis

    kernel = functools.partial(
        _yolo_loss_grid_kernel,
        lambda_coord=float(lambda_coord),
        lambda_noobj=float(lambda_noobj),
        chunk_rows=chunk_rows)

    out = pl.pallas_call(
        kernel,
        out_shape=jax.ShapeDtypeStruct((_N_CORE_SPLITS, 8, 128), jnp.float32),
        grid_spec=pltpu.PrefetchScalarGridSpec(
            num_scalar_prefetch=0,
            grid=(_N_CORE_SPLITS, nbpc),
            in_specs=[
                pl.BlockSpec((C, tr, 128),
                             lambda i, j, nbpc=nbpc: (0, i * nbpc + j, 0)),
                pl.BlockSpec((C, tr, 128),
                             lambda i, j, nbpc=nbpc: (0, i * nbpc + j, 0)),
            ],
            out_specs=pl.BlockSpec((1, 8, 128), lambda i, j: (i, 0, 0)),
            scratch_shapes=[
                pltpu.VMEM((8, 128), jnp.float32),
                pltpu.VMEM((8, 128), jnp.float32),
                pltpu.VMEM((8, 128), jnp.float32),
            ],
        ),
        compiler_params=pltpu.CompilerParams(
            dimension_semantics=("parallel", "arbitrary"),
            vmem_limit_bytes=32 * 1024 * 1024),
        cost_estimate=cost,
    )(p3d, t3d)

    # Sum the per-core partial losses (losses are linear in the cell sums).
    totals = jnp.sum(out[:, 0, :4], axis=0)
    return totals[0], totals[1], totals[2], totals[3]


def _reference(pred, target, lambda_coord=5.0, lambda_noobj=0.5):
    """Pure-JAX reference with identical semantics to the PyTorch module."""
    pred = pred.astype(jnp.float32)
    target = target.astype(jnp.float32)
    obj = (target[..., 4] > 0).astype(jnp.float32)
    noobj = (target[..., 4] == 0).astype(jnp.float32)

    loc = lambda_coord * jnp.sum(
        obj[..., None] * (pred[..., :2] - target[..., :2]) ** 2)
    loc = loc + lambda_coord * jnp.sum(
        obj[..., None] * (pred[..., 2:4] - target[..., 2:4]) ** 2)

    def corners(b):
        x1 = b[..., 0] - b[..., 2] / 2
        y1 = b[..., 1] - b[..., 3] / 2
        x2 = b[..., 0] + b[..., 2] / 2
        y2 = b[..., 1] + b[..., 3] / 2
        return x1, y1, x2, y2

    px1, py1, px2, py2 = corners(pred[..., :4])
    tx1, ty1, tx2, ty2 = corners(target[..., :4])
    inter = (jnp.clip(jnp.minimum(px2, tx2) - jnp.maximum(px1, tx1), 0, None)
             * jnp.clip(jnp.minimum(py2, ty2) - jnp.maximum(py1, ty1), 0, None))
    union = (px2 - px1) * (py2 - py1) + (tx2 - tx1) * (ty2 - ty1) - inter
    iou = inter / (union + 1e-6)

    c_obj = jnp.sum(obj * (iou - pred[..., 4]) ** 2)
    c_noobj = lambda_noobj * jnp.sum(noobj * (pred[..., 4] - target[..., 4]) ** 2)
    total = loc + c_obj + c_noobj
    return total, loc, c_obj, c_noobj


if __name__ == "__main__":
    key = jax.random.PRNGKey(0)

    def make_inputs(batch, s, k):
        k1, k2, k3 = jax.random.split(k, 3)
        pred = jax.random.uniform(k1, (batch, s, s, 5), dtype=jnp.float32)
        t_coords = jax.random.uniform(k2, (batch, s, s, 4), dtype=jnp.float32)
        t_conf = (jax.random.uniform(k3, (batch, s, s, 1)) > 0.5).astype(jnp.float32)
        target = jnp.concatenate([t_coords, t_conf], axis=-1)
        return pred, target

    k_small, k_big = jax.random.split(key)

    # Canonical small case (B=2, S=7): single-block fast path.
    pred, target = make_inputs(2, 7, k_small)
    got = yolo_v1_loss(pred, target)
    jax.block_until_ready(got)
    ref = _reference(pred, target)
    np.testing.assert_allclose(np.array(got), np.array(ref), rtol=1e-5, atol=1e-5)

    # Larger batch: exercises the tiled, dual-core-split reduction path.
    pred_b, target_b = make_inputs(1400, 7, k_big)
    got_b = yolo_v1_loss(pred_b, target_b)
    jax.block_until_ready(got_b)
    ref_b = _reference(pred_b, target_b)
    np.testing.assert_allclose(np.array(got_b), np.array(ref_b),
                               rtol=1e-4, atol=1e-4)

    print("KERNEL_OK")
</pallas_src>

<mosaic_0001>
module attributes {stable_mosaic.version = 11 : i64} {
  func.func @_yolo_loss_single_kernel(%arg0: memref<5x8x128xf32, #tpu.memory_space<vmem>>, %arg1: memref<5x8x128xf32, #tpu.memory_space<vmem>>, %arg2: memref<8x128xf32, #tpu.memory_space<vmem>>) attributes {dimension_semantics = [], scalar_prefetch = 0 : i64, scratch_operands = 0 : i64, tpu.core_type = #tpu.core_type<tc>} {
    %cst = arith.constant 0.000000e+00 : f32
    %0 = vector.broadcast %cst : f32 to vector<8x128xf32>
    %c0_i32 = arith.constant 0 : i32
    %c8_i32 = arith.constant 8 : i32
    %1 = arith.muli %c0_i32, %c8_i32 : i32
    %2 = tpu.assume_multiple %1, 8 : i32
    %c0 = arith.constant 0 : index
    %3 = arith.index_cast %2 : i32 to index
    %c0_0 = arith.constant 0 : index
    %4 = vector.load %arg0[%c0, %3, %c0_0] : memref<5x8x128xf32, #tpu.memory_space<vmem>>, vector<5x8x128xf32>
    %c0_1 = arith.constant 0 : index
    %5 = arith.index_cast %2 : i32 to index
    %c0_2 = arith.constant 0 : index
    %6 = vector.load %arg1[%c0_1, %5, %c0_2] : memref<5x8x128xf32, #tpu.memory_space<vmem>>, vector<5x8x128xf32>
    %7 = vector.extract_strided_slice %4 {offsets = [0, 0, 0], sizes = [1, 8, 128], strides = [1, 1, 1]} : vector<5x8x128xf32> to vector<1x8x128xf32>
    %8 = vector.shape_cast %7 : vector<1x8x128xf32> to vector<8x128xf32>
    %9 = vector.extract_strided_slice %4 {offsets = [1, 0, 0], sizes = [1, 8, 128], strides = [1, 1, 1]} : vector<5x8x128xf32> to vector<1x8x128xf32>
    %10 = vector.shape_cast %9 : vector<1x8x128xf32> to vector<8x128xf32>
    %11 = vector.extract_strided_slice %4 {offsets = [2, 0, 0], sizes = [1, 8, 128], strides = [1, 1, 1]} : vector<5x8x128xf32> to vector<1x8x128xf32>
    %12 = vector.shape_cast %11 : vector<1x8x128xf32> to vector<8x128xf32>
    %13 = vector.extract_strided_slice %4 {offsets = [3, 0, 0], sizes = [1, 8, 128], strides = [1, 1, 1]} : vector<5x8x128xf32> to vector<1x8x128xf32>
    %14 = vector.shape_cast %13 : vector<1x8x128xf32> to vector<8x128xf32>
    %15 = vector.extract_strided_slice %4 {offsets = [4, 0, 0], sizes = [1, 8, 128], strides = [1, 1, 1]} : vector<5x8x128xf32> to vector<1x8x128xf32>
    %16 = vector.shape_cast %15 : vector<1x8x128xf32> to vector<8x128xf32>
    %17 = vector.extract_strided_slice %6 {offsets = [0, 0, 0], sizes = [1, 8, 128], strides = [1, 1, 1]} : vector<5x8x128xf32> to vector<1x8x128xf32>
    %18 = vector.shape_cast %17 : vector<1x8x128xf32> to vector<8x128xf32>
    %19 = vector.extract_strided_slice %6 {offsets = [1, 0, 0], sizes = [1, 8, 128], strides = [1, 1, 1]} : vector<5x8x128xf32> to vector<1x8x128xf32>
    %20 = vector.shape_cast %19 : vector<1x8x128xf32> to vector<8x128xf32>
    %21 = vector.extract_strided_slice %6 {offsets = [2, 0, 0], sizes = [1, 8, 128], strides = [1, 1, 1]} : vector<5x8x128xf32> to vector<1x8x128xf32>
    %22 = vector.shape_cast %21 : vector<1x8x128xf32> to vector<8x128xf32>
    %23 = vector.extract_strided_slice %6 {offsets = [3, 0, 0], sizes = [1, 8, 128], strides = [1, 1, 1]} : vector<5x8x128xf32> to vector<1x8x128xf32>
    %24 = vector.shape_cast %23 : vector<1x8x128xf32> to vector<8x128xf32>
    %25 = vector.extract_strided_slice %6 {offsets = [4, 0, 0], sizes = [1, 8, 128], strides = [1, 1, 1]} : vector<5x8x128xf32> to vector<1x8x128xf32>
    %26 = vector.shape_cast %25 : vector<1x8x128xf32> to vector<8x128xf32>
    %cst_3 = arith.constant 0.000000e+00 : f32
    %27 = vector.broadcast %cst_3 : f32 to vector<8x128xf32>
    %28 = arith.cmpf ogt, %26, %27 : vector<8x128xf32>
    %29 = arith.extui %28 : vector<8x128xi1> to vector<8x128xi32>
    %30 = arith.sitofp %29 : vector<8x128xi32> to vector<8x128xf32>
    %cst_4 = arith.constant 0.000000e+00 : f32
    %31 = vector.broadcast %cst_4 : f32 to vector<8x128xf32>
    %32 = arith.cmpf oeq, %26, %31 : vector<8x128xf32>
    %33 = arith.extui %32 : vector<8x128xi1> to vector<8x128xi32>
    %34 = arith.sitofp %33 : vector<8x128xi32> to vector<8x128xf32>
    %35 = arith.subf %8, %18 : vector<8x128xf32>
    %36 = arith.subf %10, %20 : vector<8x128xf32>
    %37 = arith.subf %12, %22 : vector<8x128xf32>
    %38 = arith.subf %14, %24 : vector<8x128xf32>
    %39 = arith.mulf %35, %35 : vector<8x128xf32>
    %40 = arith.mulf %36, %36 : vector<8x128xf32>
    %41 = arith.addf %39, %40 : vector<8x128xf32>
    %42 = arith.mulf %37, %37 : vector<8x128xf32>
    %43 = arith.addf %41, %42 : vector<8x128xf32>
    %44 = arith.mulf %38, %38 : vector<8x128xf32>
    %45 = arith.addf %43, %44 : vector<8x128xf32>
    %46 = arith.mulf %30, %45 : vector<8x128xf32>
    %cst_5 = arith.constant 5.000000e-01 : f32
    %47 = vector.broadcast %cst_5 : f32 to vector<8x128xf32>
    %48 = arith.mulf %12, %47 : vector<8x128xf32>
    %cst_6 = arith.constant 5.000000e-01 : f32
    %49 = vector.broadcast %cst_6 : f32 to vector<8x128xf32>
    %50 = arith.mulf %14, %49 : vector<8x128xf32>
    %cst_7 = arith.constant 5.000000e-01 : f32
    %51 = vector.broadcast %cst_7 : f32 to vector<8x128xf32>
    %52 = arith.mulf %22, %51 : vector<8x128xf32>
    %cst_8 = arith.constant 5.000000e-01 : f32
    %53 = vector.broadcast %cst_8 : f32 to vector<8x128xf32>
    %54 = arith.mulf %24, %53 : vector<8x128xf32>
    %55 = arith.addf %8, %48 : vector<8x128xf32>
    %56 = arith.addf %18, %52 : vector<8x128xf32>
    %57 = arith.minimumf %55, %56 : vector<8x128xf32>
    %58 = arith.subf %8, %48 : vector<8x128xf32>
    %59 = arith.subf %18, %52 : vector<8x128xf32>
    %60 = arith.maximumf %58, %59 : vector<8x128xf32>
    %61 = arith.subf %57, %60 : vector<8x128xf32>
    %cst_9 = arith.constant 0.000000e+00 : f32
    %62 = vector.broadcast %cst_9 : f32 to vector<8x128xf32>
    %63 = arith.maximumf %61, %62 : vector<8x128xf32>
    %64 = arith.addf %10, %50 : vector<8x128xf32>
    %65 = arith.addf %20, %54 : vector<8x128xf32>
    %66 = arith.minimumf %64, %65 : vector<8x128xf32>
    %67 = arith.subf %10, %50 : vector<8x128xf32>
    %68 = arith.subf %20, %54 : vector<8x128xf32>
    %69 = arith.maximumf %67, %68 : vector<8x128xf32>
    %70 = arith.subf %66, %69 : vector<8x128xf32>
    %cst_10 = arith.constant 0.000000e+00 : f32
    %71 = vector.broadcast %cst_10 : f32 to vector<8x128xf32>
    %72 = arith.maximumf %70, %71 : vector<8x128xf32>
    %73 = arith.mulf %63, %72 : vector<8x128xf32>
    %74 = arith.mulf %12, %14 : vector<8x128xf32>
    %75 = arith.mulf %22, %24 : vector<8x128xf32>
    %76 = arith.addf %74, %75 : vector<8x128xf32>
    %77 = arith.subf %76, %73 : vector<8x128xf32>
    %cst_11 = arith.constant 9.99999997E-7 : f32
    %78 = vector.broadcast %cst_11 : f32 to vector<8x128xf32>
    %79 = arith.addf %77, %78 : vector<8x128xf32>
    %80 = arith.divf %73, %79 : vector<8x128xf32>
    %81 = arith.subf %80, %16 : vector<8x128xf32>
    %82 = arith.mulf %30, %81 : vector<8x128xf32>
    %83 = arith.mulf %82, %81 : vector<8x128xf32>
    %84 = arith.subf %16, %26 : vector<8x128xf32>
    %85 = arith.mulf %34, %84 : vector<8x128xf32>
    %86 = arith.mulf %85, %84 : vector<8x128xf32>
    %87 = vector.shape_cast %46 : vector<8x128xf32> to vector<1x8x128xf32>
    %cst_12 = arith.constant dense<0.000000e+00> : vector<8x128xf32>
    %88 = vector.multi_reduction <add>, %87, %cst_12 [0] : vector<1x8x128xf32> to vector<8x128xf32>
    %89 = arith.addf %0, %88 : vector<8x128xf32>
    %90 = vector.shape_cast %83 : vector<8x128xf32> to vector<1x8x128xf32>
    %cst_13 = arith.constant dense<0.000000e+00> : vector<8x128xf32>
    %91 = vector.multi_reduction <add>, %90, %cst_13 [0] : vector<1x8x128xf32> to vector<8x128xf32>
    %92 = arith.addf %0, %91 : vector<8x128xf32>
    %93 = vector.shape_cast %86 : vector<8x128xf32> to vector<1x8x128xf32>
    %cst_14 = arith.constant dense<0.000000e+00> : vector<8x128xf32>
    %94 = vector.multi_reduction <add>, %93, %cst_14 [0] : vector<1x8x128xf32> to vector<8x128xf32>
    %95 = arith.addf %0, %94 : vector<8x128xf32>
    %c1_i32 = arith.constant 1 : i32
    %96 = vector.shape_cast %89 : vector<8x128xf32> to vector<1x8x128xf32>
    %cst_15 = arith.constant dense<0.000000e+00> : vector<1xf32>
    %97 = vector.multi_reduction <add>, %96, %cst_15 [1, 2] : vector<1x8x128xf32> to vector<1xf32>
    %98 = vector.shape_cast %97 : vector<1xf32> to vector<1x1x1xf32>
    %99 = vector.extract %98[0, 0, 0] : f32 from vector<1x1x1xf32>
    %cst_16 = arith.constant 5.000000e+00 : f32
    %100 = arith.mulf %cst_16, %99 : f32
    %101 = vector.shape_cast %92 : vector<8x128xf32> to vector<1x8x128xf32>
    %cst_17 = arith.constant dense<0.000000e+00> : vector<1xf32>
    %102 = vector.multi_reduction <add>, %101, %cst_17 [1, 2] : vector<1x8x128xf32> to vector<1xf32>
    %103 = vector.shape_cast %102 : vector<1xf32> to vector<1x1x1xf32>
    %104 = vector.extract %103[0, 0, 0] : f32 from vector<1x1x1xf32>
    %105 = vector.shape_cast %95 : vector<8x128xf32> to vector<1x8x128xf32>
    %cst_18 = arith.constant dense<0.000000e+00> : vector<1xf32>
    %106 = vector.multi_reduction <add>, %105, %cst_18 [1, 2] : vector<1x8x128xf32> to vector<1xf32>
    %107 = vector.shape_cast %106 : vector<1xf32> to vector<1x1x1xf32>
    %108 = vector.extract %107[0, 0, 0] : f32 from vector<1x1x1xf32>
    %cst_19 = arith.constant 5.000000e-01 : f32
    %109 = arith.mulf %cst_19, %108 : f32
    %110 = arith.addf %100, %104 : f32
    %111 = arith.addf %110, %109 : f32
    %112 = tpu.iota {dimensions = array<i32: 1>} : vector<8x128xi32>
    %c0_i32_20 = arith.constant 0 : i32
    %113 = vector.broadcast %c0_i32_20 : i32 to vector<8x128xi32>
    %114 = arith.cmpi eq, %112, %113 : vector<8x128xi32>
    %c1_i32_21 = arith.constant 1 : i32
    %115 = vector.broadcast %c1_i32_21 : i32 to vector<8x128xi32>
    %116 = arith.cmpi eq, %112, %115 : vector<8x128xi32>
    %c2_i32 = arith.constant 2 : i32
    %117 = vector.broadcast %c2_i32 : i32 to vector<8x128xi32>
    %118 = arith.cmpi eq, %112, %117 : vector<8x128xi32>
    %c3_i32 = arith.constant 3 : i32
    %119 = vector.broadcast %c3_i32 : i32 to vector<8x128xi32>
    %120 = arith.cmpi eq, %112, %119 : vector<8x128xi32>
    %cst_22 = arith.constant 0.000000e+00 : f32
    %121 = vector.broadcast %109 : f32 to vector<8x128xf32>
    %122 = vector.broadcast %cst_22 : f32 to vector<8x128xf32>
    %123 = arith.select %120, %121, %122 : vector<8x128xi1>, vector<8x128xf32>
    %124 = vector.broadcast %104 : f32 to vector<8x128xf32>
    %125 = arith.select %118, %124, %123 : vector<8x128xi1>, vector<8x128xf32>
    %126 = vector.broadcast %100 : f32 to vector<8x128xf32>
    %127 = arith.select %116, %126, %125 : vector<8x128xi1>, vector<8x128xf32>
    %128 = vector.broadcast %111 : f32 to vector<8x128xf32>
    %129 = arith.select %114, %128, %127 : vector<8x128xi1>, vector<8x128xf32>
    %c0_23 = arith.constant 0 : index
    %c0_24 = arith.constant 0 : index
    %130 = vector.load %arg2[%c0_23, %c0_24] : memref<8x128xf32, #tpu.memory_space<vmem>>, vector<8x128xf32>
    tpu.vector_store %arg2[%c0_23, %c0_24], %129 {strides = array<i32>} : memref<8x128xf32, #tpu.memory_space<vmem>>, vector<8x128xf32>,
    return
  }
}

</mosaic_0001>

<bundles_post_ra>
// kernel: yolo_v1_loss.1
= control target key start
LH: loop header
LB: loop body
LE: loop exit
PB: predicated region body
PF: predicated region fallthrough
CT: control target
= control target key end

     0   :  { %v140_v38 = vmov 0.0   ;;  %s190_s0 = inlined_call_operand.vmem [shape: f32[5,8,128], index: 0, kind: input, shape index: {}]   ;;  %s191_s1 = inlined_call_operand.vmem [shape: f32[5,8,128], index: 1, kind: input, shape index: {}]   ;;  %s192_s2 = inlined_call_operand.vmem [shape: f32[8,128], index: 2, kind: output, shape index: {}]  }
   0x1   :  { %v11_v0 = vld [vmem:[%s190_s0] sm:$0xff]  ;;  %v13_v1 = vld [vmem:[%s190_s0 + $0x10] sm:$0xff]  ;;  %v12_v2 = vld [vmem:[%s190_s0 + $0x8] sm:$0xff] }
   0x2   :  { %v14_v3 = vld [vmem:[%s190_s0 + $0x18] sm:$0xff]  ;;  %v16_v4 = vld [vmem:[%s191_s1] sm:$0xff]  ;;  %v39_v5 = vmul.f32 0.5, %v13_v1  ;;  %v17_v6 = vld [vmem:[%s191_s1 + $0x8] sm:$0xff] }
   0x3   :  { %v18_v7 = vld [vmem:[%s191_s1 + $0x10] sm:$0xff]  ;;  %v19_v8 = vld [vmem:[%s191_s1 + $0x18] sm:$0xff]  ;;  %v27_v9 = vsub.f32 %v11_v0, %v16_v4  ;;  %v40_v10 = vmul.f32 0.5, %v14_v3  ;;  %v20_v11 = vld [vmem:[%s191_s1 + $0x20] sm:$0xff]  ;;  %v28_v12 = vsub.f32 %v12_v2, %v17_v6  ;;  %v60_v19 = vmul.f32 %v14_v3, %v13_v1 }
   0x4   :  { %v29_v13 = vsub.f32 %v13_v1, %v18_v7  ;;  %v30_v14 = vsub.f32 %v14_v3, %v19_v8  ;;  %v41_v15 = vmul.f32 0.5, %v18_v7  ;;  %v42_v17 = vmul.f32 0.5, %v19_v8  ;;  %v15_v27 = vld [vmem:[%s190_s0 + $0x20] sm:$0xff] }
   0x5   :  { %v31_v16 = vmul.f32 %v27_v9, %v27_v9  ;;  %v43_v18 = vadd.f32 %v39_v5, %v11_v0  ;;  %vm21_vm0 = vcmp.gt.f32.partialorder %v20_v11, 0.0  ;;  %v32_v20 = vmul.f32 %v28_v12, %v28_v12 }
   0x6   :  { %v34_v21 = vmul.f32 %v29_v13, %v29_v13  ;;  %v36_v22 = vmul.f32 %v30_v14, %v30_v14  ;;  %v44_v23 = vadd.f32 %v41_v15, %v16_v4  ;;  %v46_v24 = vsub.f32 %v11_v0, %v39_v5 }
   0x7   :  { %v47_v25 = vsub.f32 %v16_v4, %v41_v15  ;;  %v51_v26 = vadd.f32 %v40_v10, %v12_v2  ;;  %v33_v28 = vadd.f32 %v32_v20, %v31_v16  ;;  %v52_v29 = vadd.f32 %v42_v17, %v17_v6 }
   0x8   :  { %v54_v30 = vsub.f32 %v12_v2, %v40_v10  ;;  %v55_v31 = vsub.f32 %v17_v6, %v42_v17  ;;  %v45_v32 = vmin.f32 %v43_v18, %v44_v23  ;;  %v61_v34 = vmul.f32 %v19_v8, %v18_v7 }
   0x9   :  { %v48_v33 = vmax.f32 %v46_v24, %v47_v25  ;;  %vm24_vm1 = vcmp.eq.f32.partialorder %v20_v11, 0.0  ;;  %v35_v35 = vadd.f32 %v34_v21, %v33_v28  ;;  %v53_v36 = vmin.f32 %v51_v26, %v52_v29 }
   0xa   :  { %v56_v37 = vmax.f32 %v54_v30, %v55_v31  ;;  %v130_v39 = vsel %vm24_vm1, 1.0, %v140_v38  ;;  %v129_v40 = vsel %vm21_vm0, 1.0, %v140_v38  ;;  %v70_v42 = vsub.f32 %v15_v27, %v20_v11 }
   0xb   :  { %v49_v41 = vsub.f32 %v45_v32, %v48_v33  ;;  %v37_v43 = vadd.f32 %v36_v22, %v35_v35  ;;  %v62_v49 = vadd.f32 %v61_v34, %v60_v19  ;;  %v110_v16 = vlaneseq }
   0xc   :  { %v57_v44 = vsub.f32 %v53_v36, %v56_v37  ;;  %v71_v46 = vmul.f32 %v130_v39, %v70_v42 }
   0xd   :  { %v50_v45 = vmax.f32 %v49_v41, 0.0  ;;  %v38_v47 = vmul.f32 %v129_v40, %v37_v43  ;;  %v111_v17 = vand.u32 127, %v110_v16 }
   0xe   :  { %v58_v48 = vmax.f32 %v57_v44, 0.0  ;;  %v72_v50 = vmul.f32 %v71_v46, %v70_v42 }
   0xf   :  { %79 = vadd.xlane.f32.xlu0 %v38_v47  ;;  %vm115_vm2 = vcmp.eq.s32.totalorder %v111_v17, 3  ;;  %vm114_vm3 = vcmp.eq.s32.totalorder %v111_v17, 2  ;;  %vm113_vm4 = vcmp.eq.s32.totalorder %v111_v17, 1  ;;  %vm112_vm5 = vcmp.eq.s32.totalorder %v111_v17, 0 }
  0x10   :  { %v59_v51 = vmul.f32 %v58_v48, %v50_v45  ;;  %98 = vadd.xlane.f32.xlu1 %v72_v50 }
  0x12   :  { %v63_v52 = vsub.f32 %v62_v49, %v59_v51 }
  0x14   :  { %v64_v53 = vadd.f32 1e-06, %v63_v52 }
  0x16   :  { %138 = vrcp.f32 %v64_v53 }
  0x20   :  { %v139_v54 = vpop.eup %138 }
  0x21   :  { %v66_v55 = vmul.f32 %v139_v54, %v59_v51 }
  0x23   :  { %v67_v56 = vsub.f32 %v66_v55, %v15_v27 }
  0x25   :  { %v68_v57 = vmul.f32 %v129_v40, %v67_v56 }
  0x27   :  { %v69_v58 = vmul.f32 %v68_v57, %v67_v56 }
  0x29   :  { %89 = vadd.xlane.f32.xlu0 %v69_v58 }
  0x9c   :  { %v80_v59 = vpop.xlane.xlu0 %79 }
  0x9d   :  { %v81_v60 = vrot.slane %v80_v59, 4  ;;  %v99_v2 = vpop.xlane.xlu1 %98 }
  0x9e   :  { %v100_v3 = vrot.slane %v99_v2, 4 }
  0x9f   :  { %v82_v61 = vadd.f32 %v81_v60, %v80_v59 }
  0xa0   :  { %v101_v4 = vadd.f32 %v100_v3, %v99_v2 }
  0xa1   :  { %v83_v62 = vrot.slane %v82_v61, 2 }
  0xa2   :  { %v102_v5 = vrot.slane %v101_v4, 2 }
  0xa3   :  { %v84_v63 = vadd.f32 %v83_v62, %v82_v61 }
  0xa4   :  { %v103_v9 = vadd.f32 %v102_v5, %v101_v4 }
  0xa5   :  { %v85_v0 = vrot.slane %v84_v63, 1 }
  0xa6   :  { %v104_v12 = vrot.slane %v103_v9, 1 }
  0xa7   :  { %v86_v1 = vadd.f32 %v85_v0, %v84_v63 }
  0xa8   :  { %v105_v15 = vadd.f32 %v104_v12, %v103_v9 }
  0xa9   :  { %131 = vpush %v86_v1 }
  0xb6   :  { %v90_v6 = vpop.xlane.xlu0 %89 }
  0xb7   :  { %v91_v7 = vrot.slane %v90_v6, 4 }
  0xb9   :  { %v92_v8 = vadd.f32 %v91_v7, %v90_v6 }
  0xbb   :  { %v93_v10 = vrot.slane %v92_v8, 2 }
  0xbd   :  { %v94_v11 = vadd.f32 %v93_v10, %v92_v8 }
  0xbf   :  { %v95_v13 = vrot.slane %v94_v11, 1 }
  0xc1   :  { %v96_v14 = vadd.f32 %v95_v13, %v94_v11 }
  0xc3   :  { %133 = vpush %v96_v14 }
  0xc4   :  { %135 = vpush %v105_v15 }
  0xda   :  { %s132_s0 = spop %131 }
  0xdb   :  { %s88_s1 = smul.f32 5.0, %s132_s0 }
  0xdd   :  { %v120_v21 = vstv %s88_s1 }
  0xf4   :  { %s134_s29 = spop %133 }
  0xf5   :  { %s108_s30 = sadd.f32 %s134_s29, %s88_s1  ;;  %s136_s3 = spop %135  ;;  %v118_v19 = vstv %s134_s29 }
  0xf6   :  { %s107_s4 = smul.f32 0.5, %s136_s3 }
  0xf8   :  { %s109_s5 = sadd.f32 %s108_s30, %s107_s4  ;;  %v116_v18 = vstv %s107_s4 }
  0xf9   :  { %v117_v20 = vsel %vm115_vm2, %v116_v18, 0.0 }
  0xfa   :  { %v119_v22 = vsel %vm114_vm3, %v118_v19, %v117_v20  ;;  %v122_v23 = vstv %s109_s5 }
  0xfb   :  { %v121_v24 = vsel %vm113_vm4, %v120_v21, %v119_v22 }
  0xfc   :  { %v123_v25 = vsel %vm112_vm5, %v122_v23, %v121_v24 }
  0xfd   :  { %124 = vst [vmem:[%s192_s2] sm:$0xff] %v123_v25 }

</bundles_post_ra>
